<compile_context>
chip_gen: v7x
topology: tpu7x:2x2x1
jax: 0.10.0
libtpu: 0.0.40
codegen_flags: <defaults>
</compile_context>

<pallas_src>
import functools

import jax
import jax.numpy as jnp
from jax.experimental import pallas as pl
from jax.experimental.pallas import tpu as pltpu


# ----------------------------------------------------------------------------
# helpers
# ----------------------------------------------------------------------------
def _round_up(x, m):
    return (x + m - 1) // m * m


def _choose_k_tiling(K):
    """Return (Kp, tk).  Small K -> single full-dim K block (no 128 padding).
    Large K -> largest multiple-of-128 tile (<=512) that divides K exactly."""
    if K <= 1024:
        Kp = _round_up(K, 16)          # 16: bf16 sublane packing granularity
        return Kp, Kp
    for tk in range(512, 127, -128):   # 512, 384, 256, 128
        if K % tk == 0:
            return K, tk
    Kp = _round_up(K, 128)
    return Kp, 128


def _choose_m_tiling(M):
    """Return (Mp, tm).  Keep >=2 M blocks for larger slabs (megacore)."""
    if M <= 256:
        Mp = _round_up(M, 16)
        return Mp, Mp
    return _round_up(M, 256), 256


def _tile_rows(M, cap=512):
    if M <= cap:
        t = _round_up(M, 16)
        return t, t
    return _round_up(M, cap), cap


# ----------------------------------------------------------------------------
# Fused matmul kernels: (A @ B) * scale + shift [+ residual] [+ ReLU]
#   A: bf16 activations / im2col patches, B: bf16 pre-packed weights,
#   scale/shift: folded BN (or ones/bias for FC), residual: bf16 identity slab.
# ----------------------------------------------------------------------------
def _mm_epilogue(y_f32, scale, shift, res, relu):
    y = y_f32 * scale + shift
    if res is not None:
        y = y + res.astype(jnp.float32)
    if relu:
        y = jnp.maximum(y, 0.0)
    return y


def _fused_matmul_kernel(*refs, relu, has_residual):
    if has_residual:
        a_ref, b_ref, scale_ref, shift_ref, res_ref, o_ref, acc_ref = refs
    else:
        a_ref, b_ref, scale_ref, shift_ref, o_ref, acc_ref = refs
        res_ref = None
    k = pl.program_id(2)

    @pl.when(k == 0)
    def _():
        acc_ref[...] = jnp.zeros_like(acc_ref)

    acc_ref[...] += jnp.dot(a_ref[...], b_ref[...],
                            preferred_element_type=jnp.float32)

    # Epilogue + store only once per (i, j) output tile.
    @pl.when(k == pl.num_programs(2) - 1)
    def _():
        y = _mm_epilogue(acc_ref[...], scale_ref[...], shift_ref[...],
                         res_ref[...] if has_residual else None, relu)
        o_ref[...] = y.astype(o_ref.dtype)


def _fused_matmul_kernel_1k(*refs, relu, has_residual):
    """Single K block: no accumulator scratch, no phase guards."""
    if has_residual:
        a_ref, b_ref, scale_ref, shift_ref, res_ref, o_ref = refs
    else:
        a_ref, b_ref, scale_ref, shift_ref, o_ref = refs
        res_ref = None
    y = jnp.dot(a_ref[...], b_ref[...], preferred_element_type=jnp.float32)
    y = _mm_epilogue(y, scale_ref[...], shift_ref[...],
                     res_ref[...] if has_residual else None, relu)
    o_ref[...] = y.astype(o_ref.dtype)


@functools.partial(jax.jit,
                   static_argnames=("tk", "n_valid", "relu", "out_dtype"))
def _fused_matmul(a, w, scale, shift, residual, *, tk, n_valid, relu,
                  out_dtype):
    """a: (M, K);  w: (Kp, Np) bf16 pre-packed;  scale/shift: (1, Np) f32."""
    M, K = a.shape
    Kp, Np = w.shape
    Mp, tm = _choose_m_tiling(M)
    tn = Np if Np <= 512 else 512
    k_blocks = Kp // tk

    a_p = jnp.pad(a.astype(jnp.bfloat16), ((0, Mp - M), (0, Kp - K)))

    has_res = residual is not None
    inputs = [a_p, w, scale, shift]
    in_specs = [
        pl.BlockSpec((tm, tk), lambda i, j, k: (i, k)),
        pl.BlockSpec((tk, tn), lambda i, j, k: (k, j)),
        pl.BlockSpec((1, tn), lambda i, j, k: (0, j)),
        pl.BlockSpec((1, tn), lambda i, j, k: (0, j)),
    ]
    if has_res:
        r_p = jnp.pad(residual.astype(jnp.bfloat16),
                      ((0, Mp - M), (0, Np - residual.shape[1])))
        inputs.append(r_p)
        # block index independent of k -> fetched once per (i, j) tile.
        in_specs.append(pl.BlockSpec((tm, tn), lambda i, j, k: (i, j)))

    if k_blocks == 1:
        kernel = functools.partial(_fused_matmul_kernel_1k, relu=relu,
                                   has_residual=has_res)
        scratch = []
    else:
        kernel = functools.partial(_fused_matmul_kernel, relu=relu,
                                   has_residual=has_res)
        scratch = [pltpu.VMEM((tm, tn), jnp.float32)]

    out = pl.pallas_call(
        kernel,
        out_shape=jax.ShapeDtypeStruct((Mp, Np), out_dtype),
        grid_spec=pltpu.PrefetchScalarGridSpec(
            num_scalar_prefetch=0,
            grid=(Mp // tm, Np // tn, k_blocks),
            in_specs=in_specs,
            out_specs=pl.BlockSpec((tm, tn), lambda i, j, k: (i, j)),
            scratch_shapes=scratch),
        compiler_params=pltpu.CompilerParams(
            dimension_semantics=("parallel", "parallel", "arbitrary")),
    )(*inputs)
    return out[:M, :n_valid]


def fused_matmul(a, layer, residual=None, relu=False,
                 out_dtype=jnp.bfloat16):
    return _fused_matmul(a, layer["w"], layer["scale"], layer["shift"],
                         residual, tk=layer["tk"], n_valid=layer["n"],
                         relu=relu, out_dtype=out_dtype)


# ----------------------------------------------------------------------------
# Pooling kernels (tiled grids, native reductions)
# ----------------------------------------------------------------------------
def _max_taps_kernel(x_ref, o_ref):
    o_ref[...] = jnp.max(x_ref[...], axis=0)


@jax.jit
def maxpool_3x3_s2_p1(x):
    N, H, W, C = x.shape
    Ho = (H + 2 - 3) // 2 + 1
    Wo = (W + 2 - 3) // 2 + 1
    xp = jnp.pad(x, ((0, 0), (1, 1), (1, 1), (0, 0)),
                 constant_values=-jnp.inf)
    slabs = []
    for i in range(3):
        for j in range(3):
            patch = jax.lax.slice(
                xp, (0, i, j, 0),
                (N, i + (Ho - 1) * 2 + 1, j + (Wo - 1) * 2 + 1, C),
                (1, 2, 2, 1))
            slabs.append(patch.reshape(N * Ho * Wo, C))
    stacked = jnp.stack(slabs, axis=0)                      # (9, M, C)
    M = N * Ho * Wo
    Mp, tm = _tile_rows(M)
    stacked = jnp.pad(stacked, ((0, 0), (0, Mp - M), (0, 0)))
    out = pl.pallas_call(
        _max_taps_kernel,
        out_shape=jax.ShapeDtypeStruct((Mp, C), x.dtype),
        grid_spec=pltpu.PrefetchScalarGridSpec(
            num_scalar_prefetch=0,
            grid=(Mp // tm,),
            in_specs=[pl.BlockSpec((9, tm, C), lambda m: (0, m, 0))],
            out_specs=pl.BlockSpec((tm, C), lambda m: (m, 0))),
        compiler_params=pltpu.CompilerParams(
            dimension_semantics=("parallel",)),
    )(stacked)
    return out[:M].reshape(N, Ho, Wo, C)


def _spatial_mean_kernel(x_ref, o_ref):
    o_ref[...] = jnp.mean(x_ref[...].astype(jnp.float32),
                          axis=1).astype(o_ref.dtype)


@jax.jit
def pallas_global_avgpool(x):
    N, H, W, C = x.shape
    HW = H * W
    x3 = x.reshape(N, HW, C)
    tc = C
    for cand in (512, 256, 128):
        if C > 512 and C % cand == 0:
            tc = cand
            break
    return pl.pallas_call(
        _spatial_mean_kernel,
        out_shape=jax.ShapeDtypeStruct((N, C), x.dtype),
        grid_spec=pltpu.PrefetchScalarGridSpec(
            num_scalar_prefetch=0,
            grid=(C // tc,),
            in_specs=[pl.BlockSpec((N, HW, tc), lambda c: (0, 0, c))],
            out_specs=pl.BlockSpec((N, tc), lambda c: (0, c))),
        compiler_params=pltpu.CompilerParams(
            dimension_semantics=("parallel",)),
    )(x3)


# ----------------------------------------------------------------------------
# Conv glue: im2col (JAX) + fused Pallas matmul (BN / residual / ReLU epilogue)
# ----------------------------------------------------------------------------
def conv_bn(x, layer, stride, relu, residual=None):
    N, H, W, C = x.shape
    kh, kw = layer["kh"], layer["kw"]
    pad = (kh - 1) // 2
    Ho = (H + 2 * pad - kh) // stride + 1
    Wo = (W + 2 * pad - kw) // stride + 1

    if kh == 1 and kw == 1:
        xs = x[:, ::stride, ::stride, :] if stride > 1 else x
        patches = xs.reshape(N * Ho * Wo, C)
    else:
        # TODO(synk): stream the kh*kw shifted input slices through the matmul
        # pipeline (extra 'arbitrary' grid axis) instead of materializing im2col.
        xp = jnp.pad(x, ((0, 0), (pad, pad), (pad, pad), (0, 0)))
        cols = []
        for i in range(kh):
            for j in range(kw):
                cols.append(jax.lax.slice(
                    xp, (0, i, j, 0),
                    (N, i + (Ho - 1) * stride + 1,
                     j + (Wo - 1) * stride + 1, C),
                    (1, stride, stride, 1)))
        patches = jnp.concatenate(cols, axis=-1).reshape(
            N * Ho * Wo, kh * kw * C)

    res2d = None if residual is None else residual.reshape(N * Ho * Wo, -1)
    out = fused_matmul(patches, layer, residual=res2d, relu=relu)
    return out.reshape(N, Ho, Wo, layer["n"])


# ----------------------------------------------------------------------------
# Parameter construction (deterministic synthetic weights, pre-packed to bf16)
# ----------------------------------------------------------------------------
def _pack_dense(w2d, scale, shift):
    K, N = w2d.shape
    Kp, tk = _choose_k_tiling(K)
    Np = _round_up(N, 128)
    return {
        "w": jnp.pad(w2d, ((0, Kp - K), (0, Np - N))).astype(jnp.bfloat16),
        "scale": jnp.pad(scale, (0, Np - N)).reshape(1, Np).astype(jnp.float32),
        "shift": jnp.pad(shift, (0, Np - N)).reshape(1, Np).astype(jnp.float32),
        "tk": int(tk), "n": int(N),
    }


def _pack_conv_bn(w4d, scale, shift):
    kh, kw, cin, cout = w4d.shape
    d = _pack_dense(w4d.reshape(kh * kw * cin, cout), scale, shift)
    d["kh"], d["kw"] = int(kh), int(kw)
    return d


def make_params(key, num_classes=10):
    cnt = [0]

    def nk():
        cnt[0] += 1
        return jax.random.fold_in(key, cnt[0])

    def conv_w(kh, kw, cin, cout):
        fan_in = kh * kw * cin
        return ((2.0 / fan_in) ** 0.5 *
                jax.random.normal(nk(), (kh, kw, cin, cout), jnp.float32))

    def bn(c):
        gamma = 1.0 + 0.1 * jax.random.normal(nk(), (c,), jnp.float32)
        beta = 0.1 * jax.random.normal(nk(), (c,), jnp.float32)
        mean = 0.1 * jax.random.normal(nk(), (c,), jnp.float32)
        var = jnp.abs(jax.random.normal(nk(), (c,), jnp.float32)) + 0.5
        scale = gamma / jnp.sqrt(var + 1e-5)        # fold eval-mode BN
        shift = beta - mean * scale
        return scale, shift

    def conv_bn_layer(kh, kw, cin, cout):
        w = conv_w(kh, kw, cin, cout)
        s, b = bn(cout)
        return _pack_conv_bn(w, s, b)

    params = {"conv1": conv_bn_layer(7, 7, 3, 64)}

    layers = []
    in_ch = 64
    for planes, blocks, stride in [(64, 3, 1), (128, 4, 2),
                                   (256, 6, 2), (512, 3, 2)]:
        layer = []
        for b_i in range(blocks):
            s = stride if b_i == 0 else 1
            blk = {"stride": s,
                   "c1": conv_bn_layer(1, 1, in_ch, planes),
                   "c2": conv_bn_layer(3, 3, planes, planes),
                   "c3": conv_bn_layer(1, 1, planes, planes * 4)}
            if s != 1 or in_ch != planes * 4:
                blk["cd"] = conv_bn_layer(1, 1, in_ch, planes * 4)
            layer.append(blk)
            in_ch = planes * 4
        layers.append(layer)
    params["layers"] = layers

    def fc_layer(cin, cout):
        w = 0.02 * jax.random.normal(nk(), (cin, cout), jnp.float32)
        b = 0.01 * jax.random.normal(nk(), (cout,), jnp.float32)
        return _pack_dense(w, jnp.ones((cout,), jnp.float32), b)

    params["fc1"] = fc_layer(2048, 1024)
    params["fc2"] = fc_layer(1024, num_classes)
    return params


# ----------------------------------------------------------------------------
# Forward pass (matches MyResNet._forward_impl)
# ----------------------------------------------------------------------------
def bottleneck(x, p):
    out = conv_bn(x, p["c1"], stride=1, relu=True)
    out = conv_bn(out, p["c2"], stride=p["stride"], relu=True)
    if "cd" in p:
        identity = conv_bn(x, p["cd"], stride=p["stride"], relu=False)
    else:
        identity = x
    # conv3 + BN + residual add + ReLU fused in one matmul epilogue
    return conv_bn(out, p["c3"], stride=1, relu=True, residual=identity)


def my_resnet_forward(params, x_nchw):
    # NCHW (PyTorch) -> NHWC (kernel layout)
    x = jnp.transpose(x_nchw, (0, 2, 3, 1)).astype(jnp.float32)

    x = conv_bn(x, params["conv1"], stride=2, relu=True)   # conv1 + bn1 + relu
    x = maxpool_3x3_s2_p1(x)                               # maxpool 3x3/s2

    for layer in params["layers"]:                         # layer1..layer4
        for blk in layer:
            x = bottleneck(x, blk)

    x = pallas_global_avgpool(x)                           # avgpool + flatten
    x = fused_matmul(x, params["fc1"], relu=False)         # fc1 (+bias fused)
    x = fused_matmul(x, params["fc2"], relu=False,         # fc2 (+bias fused)
                     out_dtype=jnp.float32)
    return x


if __name__ == "__main__":
    key = jax.random.PRNGKey(0)
    params = make_params(jax.random.fold_in(key, 1), num_classes=10)
    # Small but consistent input: 3-channel image, 32x32 so layer4 output is 1x1.
    x = jax.random.normal(jax.random.fold_in(key, 2), (2, 3, 32, 32),
                          dtype=jnp.float32)

    logits = my_resnet_forward(params, x)
    logits = jax.block_until_ready(logits)
    assert logits.shape == (2, 10), logits.shape
    assert bool(jnp.all(jnp.isfinite(logits)))
    print("KERNEL_OK")
</pallas_src>

<mosaic_0001>
module attributes {stable_mosaic.version = 11 : i64} {
  func.func @_fused_matmul_kernel_1k(%arg0: i32, %arg1: i32, %arg2: i32, %arg3: memref<256x160xbf16, #tpu.memory_space<vmem>>, %arg4: memref<160x128xbf16, #tpu.memory_space<vmem>>, %arg5: memref<1x128xf32, #tpu.memory_space<vmem>>, %arg6: memref<1x128xf32, #tpu.memory_space<vmem>>, %arg7: memref<256x128xbf16, #tpu.memory_space<vmem>>) attributes {dimension_semantics = [#tpu.dimension_semantics<parallel>, #tpu.dimension_semantics<parallel>, #tpu.dimension_semantics<arbitrary>], iteration_bounds = array<i64: 2, 1, 1>, scalar_prefetch = 0 : i64, scratch_operands = 0 : i64, tpu.core_type = #tpu.core_type<tc>, window_params = [{transform_indices = @transform_0, window_bounds = array<i64: 256, 160>}, {transform_indices = @transform_1, window_bounds = array<i64: 160, 128>}, {transform_indices = @transform_2, window_bounds = array<i64: 1, 128>}, {transform_indices = @transform_3, window_bounds = array<i64: 1, 128>}, {transform_indices = @transform_4, window_bounds = array<i64: 256, 128>}]} {
    %c0 = arith.constant 0 : index
    %c0_0 = arith.constant 0 : index
    %0 = vector.load %arg3[%c0, %c0_0] : memref<256x160xbf16, #tpu.memory_space<vmem>>, vector<256x160xbf16>
    %c0_1 = arith.constant 0 : index
    %c0_2 = arith.constant 0 : index
    %1 = vector.load %arg4[%c0_1, %c0_2] : memref<160x128xbf16, #tpu.memory_space<vmem>>, vector<160x128xbf16>
    %cst = arith.constant dense<0.000000e+00> : vector<256x128xf32>
    %2 = tpu.matmul %0, %1, %cst {dimension_numbers = #tpu.dot_dimension_numbers<[1], [0], [0], [1], [0, 0, 1, 1], [], []>} : vector<256x160xbf16>, vector<160x128xbf16>, vector<256x128xf32> -> vector<256x128xf32>
    %c0_3 = arith.constant 0 : index
    %c0_4 = arith.constant 0 : index
    %3 = vector.load %arg5[%c0_3, %c0_4] : memref<1x128xf32, #tpu.memory_space<vmem>>, vector<1x128xf32>
    %c0_5 = arith.constant 0 : index
    %c0_6 = arith.constant 0 : index
    %4 = vector.load %arg6[%c0_5, %c0_6] : memref<1x128xf32, #tpu.memory_space<vmem>>, vector<1x128xf32>
    %5 = vector.broadcast %3 : vector<1x128xf32> to vector<256x128xf32>
    %6 = arith.mulf %2, %5 : vector<256x128xf32>
    %7 = vector.broadcast %4 : vector<1x128xf32> to vector<256x128xf32>
    %8 = arith.addf %6, %7 : vector<256x128xf32>
    %cst_7 = arith.constant 0.000000e+00 : f32
    %9 = vector.broadcast %cst_7 : f32 to vector<256x128xf32>
    %10 = arith.maximumf %8, %9 : vector<256x128xf32>
    %11 = arith.truncf %10 : vector<256x128xf32> to vector<256x128xbf16>
    %c0_8 = arith.constant 0 : index
    %c0_9 = arith.constant 0 : index
    %12 = vector.load %arg7[%c0_8, %c0_9] : memref<256x128xbf16, #tpu.memory_space<vmem>>, vector<256x128xbf16>
    tpu.vector_store %arg7[%c0_8, %c0_9], %11 {strides = array<i32>} : memref<256x128xbf16, #tpu.memory_space<vmem>>, vector<256x128xbf16>,
    return
  }
  func.func @transform_0(%arg0: i32, %arg1: i32, %arg2: i32) -> (i32, i32) {
    %c0_i32 = arith.constant 0 : i32
    return %arg0, %arg2 : i32, i32
  }
  func.func @transform_1(%arg0: i32, %arg1: i32, %arg2: i32) -> (i32, i32) {
    %c0_i32 = arith.constant 0 : i32
    return %arg2, %arg1 : i32, i32
  }
  func.func @transform_2(%arg0: i32, %arg1: i32, %arg2: i32) -> (i32, i32) {
    %c0_i32 = arith.constant 0 : i32
    %c0_i32_0 = arith.constant 0 : i32
    return %c0_i32, %arg1 : i32, i32
  }
  func.func @transform_3(%arg0: i32, %arg1: i32, %arg2: i32) -> (i32, i32) {
    %c0_i32 = arith.constant 0 : i32
    %c0_i32_0 = arith.constant 0 : i32
    return %c0_i32, %arg1 : i32, i32
  }
  func.func @transform_4(%arg0: i32, %arg1: i32, %arg2: i32) -> (i32, i32) {
    %c0_i32 = arith.constant 0 : i32
    return %arg0, %arg1 : i32, i32
  }
}

</mosaic_0001>

<bundles_post_ra>
// kernel: _fused_matmul.1
= control target key start
LH: loop header
LB: loop body
LE: loop exit
PB: predicated region body
PF: predicated region fallthrough
CT: control target
= control target key end

     0   :  { %s1559_s15 = smov 0   ;;  %s1561_s16 = smov 0   ;;  %s1768_s0 = inlined_call_operand.vmem [shape: bf16[512,160], index: 0, kind: input, shape index: {}]   ;;  %s1769_s1 = inlined_call_operand.vmem [shape: bf16[160,128], index: 1, kind: input, shape index: {}]   ;;  %s1770_s2 = inlined_call_operand.vmem [shape: f32[1,128], index: 2, kind: input, shape index: {}]   ;;  %s1771_s3 = inlined_call_operand.vmem [shape: f32[1,128], index: 3, kind: input, shape index: {}]   ;;  %s1772_s4 = inlined_call_operand.vmem [shape: bf16[512,128], index: 4, kind: output, shape index: {}]  }
   0x1   :  { %s1563_s17 = smov 0  }
   0x2 LB: > { %s33_s18 = sadd.s32 1, %s1527_s16  ;;  %p1178_p0 = scmp.ge.s32.totalorder %s1531_s17, 1  ;;  %s1531_s17 = sphi %s1563_s17, %s14_s17   ;;  %s1527_s16 = sphi %s1561_s16, %s1774_s16   ;;  %s1523_s15 = sphi %s1559_s15, %s1773_s15  }
   0x3   : > { %p35_p1 = scmp.ge.s32.totalorder %s33_s18, 2  ;;  %p224_p2 = scmp.lt.s32.totalorder %s1531_s17, 3 }
   0x5   : > { %s1776_s18 = smov (%p35_p1, %s33_s18), 0  ;;  %p225_p3 = pnand %p1178_p0, %p224_p2 }
   0x6   : > { %v1451_v0 = vld [vmem:[%s1769_s1] sm:$0xff] (!%p225_p3)   ;;  %v1533_v1 = vmov (!%p225_p3), 0   ;;  %s1179_s21 = sshll.u32 (!%p225_p3), %s1523_s15, 5  ;;  %v1452_v2 = vld [vmem:[%s1769_s1 + $0x8] sm:$0xff] (!%p225_p3)   ;;  %v1453_v3 = vld [vmem:[%s1769_s1 + $0x10] sm:$0xff] (!%p225_p3)   ;;  %vm565_vm0 = vcmask (!%p225_p3), 261120  }
   0x7   : > { %228 = sbr.rel (%p225_p3) target bundleno = 327 (0x147), region = 36  ;;  %614 = vmatprep.subr.bf16.mxu0 (!%p225_p3), %v1533_v1  ;;  %1406 = vmatprep.subr.bf16.mxu1 (!%p225_p3), %v1533_v1  ;;  %p274_p4 = scmp.lt.s32.totalorder (!%p225_p3), %s1179_s21, 63  ;;  %v1454_v4 = vld [vmem:[%s1769_s1 + $0x18] sm:$0xff] (!%p225_p3)   ;;  %v1455_v7 = vld [vmem:[%s1769_s1 + $0x20] sm:$0xff] (!%p225_p3)   ;;  %v1456_v8 = vld [vmem:[%s1769_s1 + $0x28] sm:$0xff] (!%p225_p3)  }
   0x8   : > { %615 = vmatpush1.bf16.msra.mxu0 (!%p225_p3), %v1451_v0  ;;  %1416 = vmatpush1.bf16.msra.mxu1 (!%p225_p3), %v1451_v0  ;;  %v1457_v9 = vld [vmem:[%s1769_s1 + $0x30] sm:$0xff] (!%p225_p3)   ;;  %v1458_v10 = vld [vmem:[%s1769_s1 + $0x38] sm:$0xff] (!%p225_p3)   ;;  %v1459_v11 = vld [vmem:[%s1769_s1 + $0x40] sm:$0xff] (!%p225_p3)  }
   0x9   : > { %616 = vmatprep.subr.bf16.mxu0 (!%p225_p3), %v1533_v1  ;;  %1407 = vmatprep.subr.bf16.mxu1 (!%p225_p3), %v1533_v1  ;;  %v1460_v12 = vld [vmem:[%s1769_s1 + $0x48] sm:$0xff] (!%p225_p3)   ;;  %v1666_v43 = vld [vmem:[%s1770_s2] ss:$0 sm:$0xff] (!%p225_p3) }
   0xa   : > { %v1671_v45 = vld [vmem:[%s1771_s3] ss:$0 sm:$0xff] (!%p225_p3) }
   0xc   : > { %617 = vmatpush1.bf16.msra.mxu0 (!%p225_p3), %v1452_v2  ;;  %1417 = vmatpush1.bf16.msra.mxu1 (!%p225_p3), %v1452_v2 }
   0xd   : > { %618 = vmatprep.subr.bf16.mxu0 (!%p225_p3), %v1533_v1  ;;  %1408 = vmatprep.subr.bf16.mxu1 (!%p225_p3), %v1533_v1 }
   0xe   : > { %s1778_s21 = smov (!%p274_p4, %s1179_s21), 63 }
   0xf   : > { %s1278_s26 = sshll.u32 %s1778_s21, 3 }
  0x10   : > { %s1592_s29 = scalar_lea.vmem %s1768_s0, %s1278_s26  ;;  %619 = vmatpush1.bf16.msra.mxu0 %v1453_v3  ;;  %1418 = vmatpush1.bf16.msra.mxu1 %v1453_v3  ;;  %s1183_s26 = sshll.u32 %s1778_s21, 2 }
  0x11   : > { %620 = vmatprep.subr.bf16.mxu0 %v1533_v1  ;;  %1409 = vmatprep.subr.bf16.mxu1 %v1533_v1  ;;  %v1463_v5 = vld [vmem:[%s1592_s29 + $0x4] ss:$8 sps:$4 sm:$0xff]   ;;  %v1461_v13 = vld [vmem:[%s1592_s29] ss:$8 sps:$4 sm:$0xff]   ;;  %v1467_v15 = vld [vmem:[%s1592_s29 + $0x14] ss:$8 sps:$4 sm:$0xff]  }
  0x12   : > { %v1466_v6 = vld [vmem:[%s1592_s29 + $0x84] ss:$8 sps:$4 sm:$0xff]   ;;  %1226 = vmatprep.mubr.msk.bf16.mxu0 %vm565_vm0, %v1463_v5  ;;  %v1464_v14 = vld [vmem:[%s1592_s29 + $0x80] ss:$8 sps:$4 sm:$0xff]   ;;  %v1469_v16 = vld [vmem:[%s1592_s29 + $0x94] ss:$8 sps:$4 sm:$0xff]  }
  0x13   : > { %1234 = vmatprep.mubr.msk.bf16.mxu1 %vm565_vm0, %v1466_v6  ;;  %v1471_v17 = vld [vmem:[%s1592_s29 + $0x10] ss:$8 sps:$4 sm:$0xff]   ;;  %v1473_v19 = vld [vmem:[%s1592_s29 + $0x24] ss:$8 sps:$4 sm:$0xff]   ;;  %v1477_v21 = vld [vmem:[%s1592_s29 + $0x20] ss:$8 sps:$4 sm:$0xff]  }
  0x14   : > { %621 = vmatpush1.bf16.msra.mxu0 %v1454_v4  ;;  %1419 = vmatpush1.bf16.msra.mxu1 %v1454_v4  ;;  %v1472_v18 = vld [vmem:[%s1592_s29 + $0x90] ss:$8 sps:$4 sm:$0xff]   ;;  %v1475_v20 = vld [vmem:[%s1592_s29 + $0xa4] ss:$8 sps:$4 sm:$0xff]   ;;  %v1478_v22 = vld [vmem:[%s1592_s29 + $0xa0] ss:$8 sps:$4 sm:$0xff]  }
  0x15   : > { %622 = vmatprep.subr.bf16.mxu0 %v1533_v1  ;;  %1410 = vmatprep.subr.bf16.mxu1 %v1533_v1  ;;  %v1479_v23 = vld [vmem:[%s1592_s29 + $0x34] ss:$8 sps:$4 sm:$0xff]   ;;  %v1483_v25 = vld [vmem:[%s1592_s29 + $0x30] ss:$8 sps:$4 sm:$0xff]   ;;  %v1485_v27 = vld [vmem:[%s1592_s29 + $0x44] ss:$8 sps:$4 sm:$0xff]  }
  0x16   : > { %v1481_v24 = vld [vmem:[%s1592_s29 + $0xb4] ss:$8 sps:$4 sm:$0xff]   ;;  %v1484_v26 = vld [vmem:[%s1592_s29 + $0xb0] ss:$8 sps:$4 sm:$0xff]   ;;  %v1487_v28 = vld [vmem:[%s1592_s29 + $0xc4] ss:$8 sps:$4 sm:$0xff]  }
  0x17   : > { %v1489_v29 = vld [vmem:[%s1592_s29 + $0x40] ss:$8 sps:$4 sm:$0xff]   ;;  %v1491_v31 = vld [vmem:[%s1592_s29 + $0x54] ss:$8 sps:$4 sm:$0xff]   ;;  %v1495_v33 = vld [vmem:[%s1592_s29 + $0x50] ss:$8 sps:$4 sm:$0xff]  }
  0x18   : > { %623 = vmatpush1.bf16.msra.mxu0 %v1455_v7  ;;  %1420 = vmatpush1.bf16.msra.mxu1 %v1455_v7  ;;  %v1490_v30 = vld [vmem:[%s1592_s29 + $0xc0] ss:$8 sps:$4 sm:$0xff]   ;;  %v1493_v32 = vld [vmem:[%s1592_s29 + $0xd4] ss:$8 sps:$4 sm:$0xff]   ;;  %v1496_v34 = vld [vmem:[%s1592_s29 + $0xd0] ss:$8 sps:$4 sm:$0xff]  }
  0x19   : > { %624 = vmatprep.subr.bf16.mxu0 %v1533_v1  ;;  %1411 = vmatprep.subr.bf16.mxu1 %v1533_v1  ;;  %v1497_v35 = vld [vmem:[%s1592_s29 + $0x64] ss:$8 sps:$4 sm:$0xff]   ;;  %v1501_v37 = vld [vmem:[%s1592_s29 + $0x60] ss:$8 sps:$4 sm:$0xff]   ;;  %v1503_v39 = vld [vmem:[%s1592_s29 + $0x74] ss:$8 sps:$4 sm:$0xff]  }
  0x1a   : > { %v1499_v36 = vld [vmem:[%s1592_s29 + $0xe4] ss:$8 sps:$4 sm:$0xff]   ;;  %v1502_v38 = vld [vmem:[%s1592_s29 + $0xe0] ss:$8 sps:$4 sm:$0xff]   ;;  %v1505_v40 = vld [vmem:[%s1592_s29 + $0xf4] ss:$8 sps:$4 sm:$0xff]  }
  0x1b   : > { %v1507_v41 = vld [vmem:[%s1592_s29 + $0x70] ss:$8 sps:$4 sm:$0xff]  }
  0x1c   : > { %625 = vmatpush1.bf16.msra.mxu0 %v1456_v8  ;;  %1421 = vmatpush1.bf16.msra.mxu1 %v1456_v8  ;;  %v1508_v42 = vld [vmem:[%s1592_s29 + $0xf0] ss:$8 sps:$4 sm:$0xff]   ;;  %s1685_s29 = scalar_lea.vmem %s1772_s4, %s1183_s26 }
  0x1d   : > { %626 = vmatprep.subr.bf16.mxu0 %v1533_v1  ;;  %1412 = vmatprep.subr.bf16.mxu1 %v1533_v1 }
  0x20   : > { %627 = vmatpush1.bf16.msra.mxu0 %v1457_v9  ;;  %1422 = vmatpush1.bf16.msra.mxu1 %v1457_v9 }
  0x21   : > { %628 = vmatprep.subr.bf16.mxu0 %v1533_v1  ;;  %1413 = vmatprep.subr.bf16.mxu1 %v1533_v1 }
  0x24   : > { %629 = vmatpush1.bf16.msra.mxu0 %v1458_v10  ;;  %1423 = vmatpush1.bf16.msra.mxu1 %v1458_v10 }
  0x25   : > { %630 = vmatprep.subr.bf16.mxu0 %v1533_v1  ;;  %1414 = vmatprep.subr.bf16.mxu1 %v1533_v1 }
  0x28   : > { %631 = vmatpush1.bf16.msra.mxu0 %v1459_v11  ;;  %1424 = vmatpush1.bf16.msra.mxu1 %v1459_v11 }
  0x29   : > { %632 = vmatprep.subr.bf16.mxu0 %v1533_v1  ;;  %1415 = vmatprep.subr.bf16.mxu1 %v1533_v1 }
  0x2c   : > { %633 = vmatpush1.bf16.msra.mxu0 %v1460_v12  ;;  %1425 = vmatpush1.bf16.msra.mxu1 %v1460_v12 }
  0x2f   : > { %647 = vmatmul.mubr.bf16.vlgmr.msra.gmra.mrb[0].mxu0 %v1461_v13  ;;  %711 = vmatmul.mubr.bf16.vlgmr.msra.gmra.mrb[0].mxu1 %v1464_v14 }
  0x30   : > { %1227 = vmatprep.mubr.msk.bf16.mxu0 %vm565_vm0, %v1467_v15  ;;  %1235 = vmatprep.mubr.msk.bf16.mxu1 %vm565_vm0, %v1469_v16 }
  0x37   : > { %655 = vmatmul.mubr.bf16.gmra.mrb[4].mxu0 %v1471_v17  ;;  %719 = vmatmul.mubr.bf16.gmra.mrb[4].mxu1 %v1472_v18 }
  0x38   : > { %1228 = vmatprep.mubr.msk.bf16.mxu0 %vm565_vm0, %v1473_v19  ;;  %1236 = vmatprep.mubr.msk.bf16.mxu1 %vm565_vm0, %v1475_v20 }
  0x3f   : > { %663 = vmatmul.mubr.bf16.gmra.mrb[8].mxu0 %v1477_v21  ;;  %727 = vmatmul.mubr.bf16.gmra.mrb[8].mxu1 %v1478_v22 }
  0x40   : > { %1229 = vmatprep.mubr.msk.bf16.mxu0 %vm565_vm0, %v1479_v23  ;;  %1237 = vmatprep.mubr.msk.bf16.mxu1 %vm565_vm0, %v1481_v24 }
  0x47   : > { %671 = vmatmul.mubr.bf16.gmra.mrb[12].mxu0 %v1483_v25  ;;  %735 = vmatmul.mubr.bf16.gmra.mrb[12].mxu1 %v1484_v26 }
  0x48   : > { %1230 = vmatprep.mubr.msk.bf16.mxu0 %vm565_vm0, %v1485_v27  ;;  %1238 = vmatprep.mubr.msk.bf16.mxu1 %vm565_vm0, %v1487_v28 }
  0x4f   : > { %679 = vmatmul.mubr.bf16.gmra.mrb[16].mxu0 %v1489_v29  ;;  %743 = vmatmul.mubr.bf16.gmra.mrb[16].mxu1 %v1490_v30 }
  0x50   : > { %1231 = vmatprep.mubr.msk.bf16.mxu0 %vm565_vm0, %v1491_v31  ;;  %1239 = vmatprep.mubr.msk.bf16.mxu1 %vm565_vm0, %v1493_v32 }
  0x57   : > { %687 = vmatmul.mubr.bf16.gmra.mrb[20].mxu0 %v1495_v33  ;;  %751 = vmatmul.mubr.bf16.gmra.mrb[20].mxu1 %v1496_v34 }
  0x58   : > { %1232 = vmatprep.mubr.msk.bf16.mxu0 %vm565_vm0, %v1497_v35  ;;  %1240 = vmatprep.mubr.msk.bf16.mxu1 %vm565_vm0, %v1499_v36 }
  0x5f   : > { %695 = vmatmul.mubr.bf16.gmra.mrb[24].mxu0 %v1501_v37  ;;  %759 = vmatmul.mubr.bf16.gmra.mrb[24].mxu1 %v1502_v38 }
  0x60   : > { %1233 = vmatprep.mubr.msk.bf16.mxu0 %vm565_vm0, %v1503_v39  ;;  %1241 = vmatprep.mubr.msk.bf16.mxu1 %vm565_vm0, %v1505_v40 }
  0x67   : > { %703 = vmatmul.mubr.bf16.gmra.mrb[28].mxu0 %v1507_v41  ;;  %767 = vmatmul.mubr.bf16.gmra.mrb[28].mxu1 %v1508_v42 }
 0x102   : > { %v648_v44 = vpop.f32.mrb[0].mxu0  ;;  %v712_v46 = vpop.f32.mrb[0].mxu1 }
 0x103   : > { %v783_v47 = vmul.f32 %v1666_v43, %v648_v44  ;;  %v799_v48 = vmul.f32 %v1666_v43, %v712_v46  ;;  %v650_v49 = vpop.f32.mrb[1].mxu0  ;;  %v714_v50 = vpop.f32.mrb[1].mxu1 }
 0x104   : > { %v651_v51 = vpop.f32.mrb[2].mxu0  ;;  %v715_v52 = vpop.f32.mrb[2].mxu1 }
 0x105   : > { %v821_v53 = vadd.f32 %v1671_v45, %v783_v47  ;;  %v837_v54 = vadd.f32 %v1671_v45, %v799_v48  ;;  %v784_v55 = vmul.f32 %v1666_v43, %v651_v51  ;;  %v800_v56 = vmul.f32 %v1666_v43, %v715_v52  ;;  %v653_v57 = vpop.f32.mrb[3].mxu0  ;;  %v717_v58 = vpop.f32.mrb[3].mxu1 }
 0x107   : > { %v822_v59 = vadd.f32 %v1671_v45, %v784_v55  ;;  %v838_v60 = vadd.f32 %v1671_v45, %v800_v56  ;;  %v853_v61 = vmax.f32 %v821_v53, 0.0  ;;  %v869_v62 = vmax.f32 %v837_v54, 0.0 }
 0x109   : > { %v854_v63 = vmax.f32 %v822_v59, 0.0  ;;  %v870_v0 = vmax.f32 %v838_v60, 0.0 }
 0x10a   : > { %v656_v1 = vpop.f32.mrb[4].mxu0  ;;  %v720_v2 = vpop.f32.mrb[4].mxu1 }
 0x10b   : > { %v1314_v3 = vpack.c.bf16 %v854_v63, %v853_v61  ;;  %v1354_v4 = vpack.c.bf16 %v870_v0, %v869_v62  ;;  %v785_v5 = vmul.f32 %v1666_v43, %v656_v1  ;;  %v801_v6 = vmul.f32 %v1666_v43, %v720_v2  ;;  %v658_v7 = vpop.f32.mrb[5].mxu0  ;;  %v722_v8 = vpop.f32.mrb[5].mxu1 }
 0x10c   : > { %v659_v9 = vpop.f32.mrb[6].mxu0  ;;  %v723_v10 = vpop.f32.mrb[6].mxu1 }
 0x10d   : > { %1315 = vst [vmem:[%s1685_s29] sm:$0xff] %v1314_v3   ;;  %1398 = vst [vmem:[%s1685_s29 + $0x40] sm:$0xff] %v1354_v4   ;;  %v823_v11 = vadd.f32 %v1671_v45, %v785_v5  ;;  %v839_v12 = vadd.f32 %v1671_v45, %v801_v6  ;;  %v786_v13 = vmul.f32 %v1666_v43, %v659_v9  ;;  %v661_v15 = vpop.f32.mrb[7].mxu0  ;;  %v725_v16 = vpop.f32.mrb[7].mxu1 }
 0x10e   : > { %v802_v14 = vmul.f32 %v1666_v43, %v723_v10 }
 0x10f   : > { %v824_v17 = vadd.f32 %v1671_v45, %v786_v13  ;;  %v855_v19 = vmax.f32 %v823_v11, 0.0  ;;  %v871_v20 = vmax.f32 %v839_v12, 0.0 }
 0x110   : > { %v840_v18 = vadd.f32 %v1671_v45, %v802_v14 }
 0x111   : > { %v856_v21 = vmax.f32 %v824_v17, 0.0 }
 0x112   : > { %v872_v22 = vmax.f32 %v840_v18, 0.0  ;;  %v664_v23 = vpop.f32.mrb[8].mxu0  ;;  %v728_v24 = vpop.f32.mrb[8].mxu1 }
 0x113   : > { %v1319_v25 = vpack.c.bf16 %v856_v21, %v855_v19  ;;  %v787_v27 = vmul.f32 %v1666_v43, %v664_v23  ;;  %v803_v28 = vmul.f32 %v1666_v43, %v728_v24  ;;  %v666_v29 = vpop.f32.mrb[9].mxu0  ;;  %v730_v30 = vpop.f32.mrb[9].mxu1 }
 0x114   : > { %v1359_v26 = vpack.c.bf16 %v872_v22, %v871_v20  ;;  %v667_v31 = vpop.f32.mrb[10].mxu0  ;;  %v731_v32 = vpop.f32.mrb[10].mxu1 }
 0x115   : > { %1391 = vst [vmem:[%s1685_s29 + $0x8] sm:$0xff] %v1319_v25   ;;  %v825_v33 = vadd.f32 %v1671_v45, %v787_v27  ;;  %v841_v34 = vadd.f32 %v1671_v45, %v803_v28  ;;  %v788_v35 = vmul.f32 %v1666_v43, %v667_v31  ;;  %v804_v36 = vmul.f32 %v1666_v43, %v731_v32  ;;  %v669_v37 = vpop.f32.mrb[11].mxu0  ;;  %v733_v38 = vpop.f32.mrb[11].mxu1 }
 0x116   : > { %1399 = vst [vmem:[%s1685_s29 + $0x48] sm:$0xff] %v1359_v26  }
 0x117   : > { %v826_v39 = vadd.f32 %v1671_v45, %v788_v35  ;;  %v842_v40 = vadd.f32 %v1671_v45, %v804_v36  ;;  %v857_v41 = vmax.f32 %v825_v33, 0.0  ;;  %v873_v42 = vmax.f32 %v841_v34, 0.0 }
 0x119   : > { %v858_v44 = vmax.f32 %v826_v39, 0.0  ;;  %v874_v46 = vmax.f32 %v842_v40, 0.0 }
 0x11a   : > { %v672_v47 = vpop.f32.mrb[12].mxu0  ;;  %v736_v48 = vpop.f32.mrb[12].mxu1 }
 0x11b   : > { %v1324_v49 = vpack.c.bf16 %v858_v44, %v857_v41  ;;  %v1364_v50 = vpack.c.bf16 %v874_v46, %v873_v42  ;;  %v789_v51 = vmul.f32 %v1666_v43, %v672_v47  ;;  %v805_v52 = vmul.f32 %v1666_v43, %v736_v48  ;;  %v674_v53 = vpop.f32.mrb[13].mxu0  ;;  %v738_v54 = vpop.f32.mrb[13].mxu1 }
 0x11c   : > { %v675_v55 = vpop.f32.mrb[14].mxu0  ;;  %v739_v56 = vpop.f32.mrb[14].mxu1 }
 0x11d   : > { %1392 = vst [vmem:[%s1685_s29 + $0x10] sm:$0xff] %v1324_v49   ;;  %1400 = vst [vmem:[%s1685_s29 + $0x50] sm:$0xff] %v1364_v50   ;;  %v827_v57 = vadd.f32 %v1671_v45, %v789_v51  ;;  %v843_v58 = vadd.f32 %v1671_v45, %v805_v52  ;;  %v790_v59 = vmul.f32 %v1666_v43, %v675_v55  ;;  %v677_v61 = vpop.f32.mrb[15].mxu0  ;;  %v741_v62 = vpop.f32.mrb[15].mxu1 }
 0x11e   : > { %v806_v60 = vmul.f32 %v1666_v43, %v739_v56 }
 0x11f   : > { %v828_v63 = vadd.f32 %v1671_v45, %v790_v59  ;;  %v859_v1 = vmax.f32 %v827_v57, 0.0  ;;  %v875_v2 = vmax.f32 %v843_v58, 0.0 }
 0x120   : > { %v844_v0 = vadd.f32 %v1671_v45, %v806_v60 }
 0x121   : > { %v860_v3 = vmax.f32 %v828_v63, 0.0 }
 0x122   : > { %v876_v4 = vmax.f32 %v844_v0, 0.0  ;;  %v680_v5 = vpop.f32.mrb[16].mxu0  ;;  %v744_v6 = vpop.f32.mrb[16].mxu1 }
 0x123   : > { %v1329_v7 = vpack.c.bf16 %v860_v3, %v859_v1  ;;  %v791_v9 = vmul.f32 %v1666_v43, %v680_v5  ;;  %v807_v10 = vmul.f32 %v1666_v43, %v744_v6  ;;  %v682_v11 = vpop.f32.mrb[17].mxu0  ;;  %v746_v12 = vpop.f32.mrb[17].mxu1 }
 0x124   : > { %v1369_v8 = vpack.c.bf16 %v876_v4, %v875_v2  ;;  %v683_v13 = vpop.f32.mrb[18].mxu0  ;;  %v747_v14 = vpop.f32.mrb[18].mxu1 }
 0x125   : > { %1393 = vst [vmem:[%s1685_s29 + $0x18] sm:$0xff] %v1329_v7   ;;  %v829_v15 = vadd.f32 %v1671_v45, %v791_v9  ;;  %v845_v16 = vadd.f32 %v1671_v45, %v807_v10  ;;  %v792_v17 = vmul.f32 %v1666_v43, %v683_v13  ;;  %v808_v18 = vmul.f32 %v1666_v43, %v747_v14  ;;  %v685_v19 = vpop.f32.mrb[19].mxu0  ;;  %v749_v20 = vpop.f32.mrb[19].mxu1 }
 0x126   : > { %1401 = vst [vmem:[%s1685_s29 + $0x58] sm:$0xff] %v1369_v8  }
 0x127   : > { %v830_v21 = vadd.f32 %v1671_v45, %v792_v17  ;;  %v846_v22 = vadd.f32 %v1671_v45, %v808_v18  ;;  %v861_v23 = vmax.f32 %v829_v15, 0.0  ;;  %v877_v24 = vmax.f32 %v845_v16, 0.0 }
 0x129   : > { %v862_v25 = vmax.f32 %v830_v21, 0.0  ;;  %v878_v26 = vmax.f32 %v846_v22, 0.0 }
 0x12a   : > { %v688_v27 = vpop.f32.mrb[20].mxu0  ;;  %v752_v28 = vpop.f32.mrb[20].mxu1 }
 0x12b   : > { %v1334_v29 = vpack.c.bf16 %v862_v25, %v861_v23  ;;  %v1374_v30 = vpack.c.bf16 %v878_v26, %v877_v24  ;;  %v793_v31 = vmul.f32 %v1666_v43, %v688_v27  ;;  %v809_v32 = vmul.f32 %v1666_v43, %v752_v28  ;;  %v690_v33 = vpop.f32.mrb[21].mxu0  ;;  %v754_v34 = vpop.f32.mrb[21].mxu1 }
 0x12c   : > { %v691_v35 = vpop.f32.mrb[22].mxu0  ;;  %v755_v36 = vpop.f32.mrb[22].mxu1 }
 0x12d   : > { %1394 = vst [vmem:[%s1685_s29 + $0x20] sm:$0xff] %v1334_v29   ;;  %1402 = vst [vmem:[%s1685_s29 + $0x60] sm:$0xff] %v1374_v30   ;;  %v831_v37 = vadd.f32 %v1671_v45, %v793_v31  ;;  %v847_v38 = vadd.f32 %v1671_v45, %v809_v32  ;;  %v794_v39 = vmul.f32 %v1666_v43, %v691_v35  ;;  %v693_v41 = vpop.f32.mrb[23].mxu0  ;;  %v757_v42 = vpop.f32.mrb[23].mxu1 }
 0x12e   : > { %v810_v40 = vmul.f32 %v1666_v43, %v755_v36 }
 0x12f   : > { %v832_v44 = vadd.f32 %v1671_v45, %v794_v39  ;;  %v863_v47 = vmax.f32 %v831_v37, 0.0  ;;  %v879_v48 = vmax.f32 %v847_v38, 0.0 }
 0x130   : > { %v848_v46 = vadd.f32 %v1671_v45, %v810_v40 }
 0x131   : > { %v864_v49 = vmax.f32 %v832_v44, 0.0 }
 0x132   : > { %v880_v50 = vmax.f32 %v848_v46, 0.0  ;;  %v696_v51 = vpop.f32.mrb[24].mxu0  ;;  %v760_v52 = vpop.f32.mrb[24].mxu1 }
 0x133   : > { %v1339_v53 = vpack.c.bf16 %v864_v49, %v863_v47  ;;  %v795_v55 = vmul.f32 %v1666_v43, %v696_v51  ;;  %v811_v56 = vmul.f32 %v1666_v43, %v760_v52  ;;  %v698_v57 = vpop.f32.mrb[25].mxu0  ;;  %v762_v58 = vpop.f32.mrb[25].mxu1 }
 0x134   : > { %v1379_v54 = vpack.c.bf16 %v880_v50, %v879_v48  ;;  %v699_v59 = vpop.f32.mrb[26].mxu0  ;;  %v763_v60 = vpop.f32.mrb[26].mxu1 }
 0x135   : > { %1395 = vst [vmem:[%s1685_s29 + $0x28] sm:$0xff] %v1339_v53   ;;  %v833_v61 = vadd.f32 %v1671_v45, %v795_v55  ;;  %v849_v62 = vadd.f32 %v1671_v45, %v811_v56  ;;  %v796_v63 = vmul.f32 %v1666_v43, %v699_v59  ;;  %v812_v0 = vmul.f32 %v1666_v43, %v763_v60  ;;  %v701_v1 = vpop.f32.mrb[27].mxu0  ;;  %v765_v2 = vpop.f32.mrb[27].mxu1 }
 0x136   : > { %1403 = vst [vmem:[%s1685_s29 + $0x68] sm:$0xff] %v1379_v54  }
 0x137   : > { %v834_v3 = vadd.f32 %v1671_v45, %v796_v63  ;;  %v850_v4 = vadd.f32 %v1671_v45, %v812_v0  ;;  %v865_v5 = vmax.f32 %v833_v61, 0.0  ;;  %v881_v6 = vmax.f32 %v849_v62, 0.0 }
 0x139   : > { %v866_v7 = vmax.f32 %v834_v3, 0.0  ;;  %v882_v8 = vmax.f32 %v850_v4, 0.0 }
 0x13a   : > { %v704_v9 = vpop.f32.mrb[28].mxu0  ;;  %v768_v10 = vpop.f32.mrb[28].mxu1 }
 0x13b   : > { %v1344_v11 = vpack.c.bf16 %v866_v7, %v865_v5  ;;  %v1384_v12 = vpack.c.bf16 %v882_v8, %v881_v6  ;;  %v797_v13 = vmul.f32 %v1666_v43, %v704_v9  ;;  %v813_v14 = vmul.f32 %v1666_v43, %v768_v10  ;;  %v706_v15 = vpop.f32.mrb[29].mxu0  ;;  %v770_v16 = vpop.f32.mrb[29].mxu1 }
 0x13c   : > { %v707_v17 = vpop.f32.mrb[30].mxu0  ;;  %v771_v18 = vpop.f32.mrb[30].mxu1 }
 0x13d   : > { %1396 = vst [vmem:[%s1685_s29 + $0x30] sm:$0xff] %v1344_v11   ;;  %1404 = vst [vmem:[%s1685_s29 + $0x70] sm:$0xff] %v1384_v12   ;;  %v835_v19 = vadd.f32 %v1671_v45, %v797_v13  ;;  %v851_v20 = vadd.f32 %v1671_v45, %v813_v14  ;;  %v798_v21 = vmul.f32 %v1666_v43, %v707_v17  ;;  %v709_v23 = vpop.f32.mrb[31].mxu0  ;;  %v773_v24 = vpop.f32.mrb[31].mxu1 }
 0x13e   : > { %v814_v22 = vmul.f32 %v1666_v43, %v771_v18 }
 0x13f   : > { %v836_v25 = vadd.f32 %v1671_v45, %v798_v21  ;;  %v867_v27 = vmax.f32 %v835_v19, 0.0  ;;  %v883_v28 = vmax.f32 %v851_v20, 0.0 }
 0x140   : > { %v852_v26 = vadd.f32 %v1671_v45, %v814_v22 }
 0x141   : > { %v868_v29 = vmax.f32 %v836_v25, 0.0 }
 0x142   : > { %v884_v30 = vmax.f32 %v852_v26, 0.0 }
 0x143   : > { %v1349_v31 = vpack.c.bf16 %v868_v29, %v867_v27 }
 0x144   : > { %v1389_v32 = vpack.c.bf16 %v884_v30, %v883_v28 }
 0x145   : > { %1397 = vst [vmem:[%s1685_s29 + $0x38] sm:$0xff] %v1349_v31  }
 0x146   : > { %1405 = vst [vmem:[%s1685_s29 + $0x78] sm:$0xff] %v1389_v32  }
 0x147 PF: > { %s14_s17 = sadd.s32 1, %s1531_s17   ;;  %s1773_s15 = smov %s1527_s16 }
 0x148   : > { %p11_p5 = scmp.ge.s32.totalorder %s14_s17, 4   ;;  %s1774_s16 = smov %s1776_s18 }
 0x14a   :  { %13 = sbr.rel (!%p11_p5) target bundleno = 2 (0x2), region = 75 }

</bundles_post_ra>
